<compile_context>
chip_gen: v5e
topology: v5e:2x2
jax: 0.10.0
libtpu: 0.0.40
codegen_flags: <defaults>
</compile_context>

<pallas_src>
import jax
import jax.numpy as jnp
from jax.experimental import pallas as pl
from jax.experimental.pallas import tpu as pltpu

SCALE = 300.0
HIDDEN = 32
TILE = 512  # collocation points (lanes) per grid step; safe for v5e/v6e/v7x VMEM


def pinn_kernel(t_ref, w1_ref, b1_ref, w2_ref, b2_ref, w3_ref, b3_ref, o_ref):
    """One tile of TILE points. Activations are (32, TILE): features on sublanes,
    batch on lanes -> lane-dense loads/stores throughout."""
    x = t_ref[...]                                               # (1, TILE)

    # Layer 1 (Linear(1,32)): K=1 matmul is degenerate on the MXU; use a VPU
    # broadcast outer product instead.
    h1 = jnp.tanh(w1_ref[...] * x + b1_ref[...])                 # (32, TILE)

    # Layer 2 (Linear(32,32)): real MXU matmul with lane-dense (32, TILE) output.
    h2 = jnp.tanh(
        jnp.dot(w2_ref[...], h1, preferred_element_type=jnp.float32) + b2_ref[...]
    )                                                            # (32, TILE)

    # Layer 3 (Linear(32,1)): out-width-1 matmul replaced by VPU multiply +
    # sublane (feature-axis) reduction -> lane-dense (1, TILE) result.
    y = jnp.sum(w3_ref[...] * h2, axis=0, keepdims=True) + b3_ref[...]
    o_ref[...] = (y * SCALE).astype(o_ref.dtype)


def pinn_forward(t, params, *, tile=TILE):
    """t: (N, 1) float32 -> (N, 1) float32."""
    n = t.shape[0]
    n_pad = pl.cdiv(n, tile) * tile
    # Batch on lanes: (N, 1) -> (1, N_pad), zero-padded so every tile is full
    # (padding is sliced off after the kernel; nothing reduces over padded lanes).
    x = jnp.zeros((1, n_pad), jnp.float32).at[0, :n].set(t[:, 0].astype(jnp.float32))

    data_spec = pl.BlockSpec((1, tile), lambda i: (0, i))

    def resident(shape):
        # Same block every grid step -> weights/biases stay resident in VMEM.
        return pl.BlockSpec(shape, lambda i: (0, 0))

    out = pl.pallas_call(
        pinn_kernel,
        out_shape=jax.ShapeDtypeStruct((1, n_pad), jnp.float32),
        grid=(n_pad // tile,),
        in_specs=[
            data_spec,                   # t tile       (1, TILE)
            resident((HIDDEN, 1)),       # w1           (32, 1)
            resident((HIDDEN, 1)),       # b1           (32, 1)
            resident((HIDDEN, HIDDEN)),  # w2           (32, 32)
            resident((HIDDEN, 1)),       # b2           (32, 1)
            resident((HIDDEN, 1)),       # w3 (column)  (32, 1)
            resident((1, 1)),            # b3           (1, 1)
        ],
        out_specs=data_spec,
        compiler_params=pltpu.CompilerParams(
            dimension_semantics=("parallel",),  # lets v7x's 2 TCs split the batch
        ),
    )(
        x,
        params["w1"], params["b1"],
        params["w2"], params["b2"],
        params["w3"], params["b3"],
    )
    return out[0, :n].reshape(n, 1)


def init_params(key):
    """Deterministic init mimicking PyTorch nn.Linear default U(-1/sqrt(fan_in), ...)."""
    def linear(k, fan_in, fan_out):
        kw, kb = jax.random.split(k)
        bound = 1.0 / jnp.sqrt(jnp.float32(fan_in))
        w = jax.random.uniform(kw, (fan_out, fan_in), jnp.float32, -bound, bound)
        b = jax.random.uniform(kb, (fan_out, 1), jnp.float32, -bound, bound)
        return w, b

    k1, k2, k3 = jax.random.split(key, 3)
    w1, b1 = linear(k1, 1, HIDDEN)        # (32, 1), (32, 1)
    w2, b2 = linear(k2, HIDDEN, HIDDEN)   # (32, 32), (32, 1)
    w3, b3 = linear(k3, HIDDEN, 1)        # (1, 32), (1, 1)
    return {"w1": w1, "b1": b1, "w2": w2, "b2": b2,
            "w3": w3.T, "b3": b3}         # w3 stored as (32, 1) column


def pinn_reference(t, params):
    """Pure-JAX reference matching the PyTorch module."""
    h1 = jnp.tanh(t @ params["w1"].T + params["b1"].T)     # (N, 32)
    h2 = jnp.tanh(h1 @ params["w2"].T + params["b2"].T)    # (N, 32)
    return (h2 @ params["w3"] + params["b3"]) * SCALE      # (N, 1)


if __name__ == "__main__":
    key = jax.random.PRNGKey(0)
    kp, kt = jax.random.split(key)
    params = init_params(kp)

    # Small collocation batch of "time" inputs, shape (8, 1) like the PyTorch module.
    t_small = jax.random.uniform(kt, (8, 1), jnp.float32, 0.0, 1.0)
    out = jax.block_until_ready(pinn_forward(t_small, params))
    ref = pinn_reference(t_small, params)
    assert out.shape == (8, 1)
    assert jnp.allclose(out, ref, atol=1e-3, rtol=1e-4), "mismatch vs reference (small batch)"

    # Larger batch exercising multiple grid steps + remainder padding.
    t_big = jax.random.uniform(jax.random.PRNGKey(1), (600, 1), jnp.float32, 0.0, 1.0)
    out_big = jax.block_until_ready(pinn_forward(t_big, params))
    ref_big = pinn_reference(t_big, params)
    assert out_big.shape == (600, 1)
    assert jnp.allclose(out_big, ref_big, atol=1e-3, rtol=1e-4), "mismatch vs reference (big batch)"

    print("KERNEL_OK")
</pallas_src>

<mosaic_0001>
module attributes {stable_mosaic.version = 11 : i64} {
  func.func @pinn_kernel(%arg0: i32, %arg1: memref<1x512xf32, #tpu.memory_space<vmem>>, %arg2: memref<32x1xf32, #tpu.memory_space<vmem>>, %arg3: memref<32x1xf32, #tpu.memory_space<vmem>>, %arg4: memref<32x32xf32, #tpu.memory_space<vmem>>, %arg5: memref<32x1xf32, #tpu.memory_space<vmem>>, %arg6: memref<32x1xf32, #tpu.memory_space<vmem>>, %arg7: memref<1x1xf32, #tpu.memory_space<vmem>>, %arg8: memref<1x512xf32, #tpu.memory_space<vmem>>) attributes {dimension_semantics = [#tpu.dimension_semantics<parallel>], iteration_bounds = array<i64: 1>, scalar_prefetch = 0 : i64, scratch_operands = 0 : i64, tpu.core_type = #tpu.core_type<tc>, window_params = [{transform_indices = @transform_0, window_bounds = array<i64: 1, 512>}, {pipeline_mode = #tpu.pipeline_mode<synchronous>, transform_indices = @transform_1, window_bounds = array<i64: 32, 1>}, {pipeline_mode = #tpu.pipeline_mode<synchronous>, transform_indices = @transform_2, window_bounds = array<i64: 32, 1>}, {pipeline_mode = #tpu.pipeline_mode<synchronous>, transform_indices = @transform_3, window_bounds = array<i64: 32, 32>}, {pipeline_mode = #tpu.pipeline_mode<synchronous>, transform_indices = @transform_4, window_bounds = array<i64: 32, 1>}, {pipeline_mode = #tpu.pipeline_mode<synchronous>, transform_indices = @transform_5, window_bounds = array<i64: 32, 1>}, {pipeline_mode = #tpu.pipeline_mode<synchronous>, transform_indices = @transform_6, window_bounds = array<i64: 1, 1>}, {transform_indices = @transform_7, window_bounds = array<i64: 1, 512>}]} {
    %c0 = arith.constant 0 : index
    %c0_0 = arith.constant 0 : index
    %0 = vector.load %arg1[%c0, %c0_0] : memref<1x512xf32, #tpu.memory_space<vmem>>, vector<1x512xf32>
    %c0_1 = arith.constant 0 : index
    %c0_2 = arith.constant 0 : index
    %1 = vector.load %arg2[%c0_1, %c0_2] : memref<32x1xf32, #tpu.memory_space<vmem>>, vector<32x1xf32>
    %2 = vector.broadcast %1 : vector<32x1xf32> to vector<32x512xf32>
    %3 = vector.broadcast %0 : vector<1x512xf32> to vector<32x512xf32>
    %4 = arith.mulf %2, %3 : vector<32x512xf32>
    %c0_3 = arith.constant 0 : index
    %c0_4 = arith.constant 0 : index
    %5 = vector.load %arg3[%c0_3, %c0_4] : memref<32x1xf32, #tpu.memory_space<vmem>>, vector<32x1xf32>
    %6 = vector.broadcast %5 : vector<32x1xf32> to vector<32x512xf32>
    %7 = arith.addf %4, %6 : vector<32x512xf32>
    %8 = math.tanh %7 : vector<32x512xf32>
    %c0_5 = arith.constant 0 : index
    %c0_6 = arith.constant 0 : index
    %9 = vector.load %arg4[%c0_5, %c0_6] : memref<32x32xf32, #tpu.memory_space<vmem>>, vector<32x32xf32>
    %cst = arith.constant dense<0.000000e+00> : vector<32x512xf32>
    %10 = tpu.matmul %9, %8, %cst {dimension_numbers = #tpu.dot_dimension_numbers<[1], [0], [0], [1], [0, 0, 1, 1], [], []>} : vector<32x32xf32>, vector<32x512xf32>, vector<32x512xf32> -> vector<32x512xf32>
    %c0_7 = arith.constant 0 : index
    %c0_8 = arith.constant 0 : index
    %11 = vector.load %arg5[%c0_7, %c0_8] : memref<32x1xf32, #tpu.memory_space<vmem>>, vector<32x1xf32>
    %12 = vector.broadcast %11 : vector<32x1xf32> to vector<32x512xf32>
    %13 = arith.addf %10, %12 : vector<32x512xf32>
    %14 = math.tanh %13 : vector<32x512xf32>
    %c0_9 = arith.constant 0 : index
    %c0_10 = arith.constant 0 : index
    %15 = vector.load %arg6[%c0_9, %c0_10] : memref<32x1xf32, #tpu.memory_space<vmem>>, vector<32x1xf32>
    %16 = vector.broadcast %15 : vector<32x1xf32> to vector<32x512xf32>
    %17 = arith.mulf %16, %14 : vector<32x512xf32>
    %cst_11 = arith.constant dense<0.000000e+00> : vector<512xf32>
    %18 = vector.multi_reduction <add>, %17, %cst_11 [0] : vector<32x512xf32> to vector<512xf32>
    %19 = vector.shape_cast %18 : vector<512xf32> to vector<1x512xf32>
    %c0_12 = arith.constant 0 : index
    %c0_13 = arith.constant 0 : index
    %20 = vector.load %arg7[%c0_12, %c0_13] : memref<1x1xf32, #tpu.memory_space<vmem>>, vector<1x1xf32>
    %21 = vector.broadcast %20 : vector<1x1xf32> to vector<1x512xf32>
    %22 = arith.addf %19, %21 : vector<1x512xf32>
    %cst_14 = arith.constant 3.000000e+02 : f32
    %23 = vector.broadcast %cst_14 : f32 to vector<1x512xf32>
    %24 = arith.mulf %22, %23 : vector<1x512xf32>
    %c0_15 = arith.constant 0 : index
    %c0_16 = arith.constant 0 : index
    %25 = vector.load %arg8[%c0_15, %c0_16] : memref<1x512xf32, #tpu.memory_space<vmem>>, vector<1x512xf32>
    tpu.vector_store %arg8[%c0_15, %c0_16], %24 {strides = array<i32>} : memref<1x512xf32, #tpu.memory_space<vmem>>, vector<1x512xf32>,
    return
  }
  func.func @transform_0(%arg0: i32) -> (i32, i32) {
    %c0_i32 = arith.constant 0 : i32
    %c0_i32_0 = arith.constant 0 : i32
    return %c0_i32, %arg0 : i32, i32
  }
  func.func @transform_1(%arg0: i32) -> (i32, i32) {
    %c0_i32 = arith.constant 0 : i32
    %c0_i32_0 = arith.constant 0 : i32
    %c0_i32_1 = arith.constant 0 : i32
    return %c0_i32, %c0_i32_0 : i32, i32
  }
  func.func @transform_2(%arg0: i32) -> (i32, i32) {
    %c0_i32 = arith.constant 0 : i32
    %c0_i32_0 = arith.constant 0 : i32
    %c0_i32_1 = arith.constant 0 : i32
    return %c0_i32, %c0_i32_0 : i32, i32
  }
  func.func @transform_3(%arg0: i32) -> (i32, i32) {
    %c0_i32 = arith.constant 0 : i32
    %c0_i32_0 = arith.constant 0 : i32
    %c0_i32_1 = arith.constant 0 : i32
    return %c0_i32, %c0_i32_0 : i32, i32
  }
  func.func @transform_4(%arg0: i32) -> (i32, i32) {
    %c0_i32 = arith.constant 0 : i32
    %c0_i32_0 = arith.constant 0 : i32
    %c0_i32_1 = arith.constant 0 : i32
    return %c0_i32, %c0_i32_0 : i32, i32
  }
  func.func @transform_5(%arg0: i32) -> (i32, i32) {
    %c0_i32 = arith.constant 0 : i32
    %c0_i32_0 = arith.constant 0 : i32
    %c0_i32_1 = arith.constant 0 : i32
    return %c0_i32, %c0_i32_0 : i32, i32
  }
  func.func @transform_6(%arg0: i32) -> (i32, i32) {
    %c0_i32 = arith.constant 0 : i32
    %c0_i32_0 = arith.constant 0 : i32
    %c0_i32_1 = arith.constant 0 : i32
    return %c0_i32, %c0_i32_0 : i32, i32
  }
  func.func @transform_7(%arg0: i32) -> (i32, i32) {
    %c0_i32 = arith.constant 0 : i32
    %c0_i32_0 = arith.constant 0 : i32
    return %c0_i32, %arg0 : i32, i32
  }
}

</mosaic_0001>

<bundles_post_ra>
// kernel: tpu_custom_call.1
= control target key start
LH: loop header
LB: loop body
LE: loop exit
PB: predicated region body
PF: predicated region fallthrough
CT: control target
= control target key end

     0   :  { %s672_s0 = inlined_call_operand.vmem [shape: f32[1,512], index: 0, kind: input, shape index: {}]   ;;  %s673_s1 = inlined_call_operand.vmem [shape: f32[32,1], index: 1, kind: input, shape index: {}]   ;;  %s674_s2 = inlined_call_operand.vmem [shape: f32[32,1], index: 2, kind: input, shape index: {}]   ;;  %s675_s3 = inlined_call_operand.vmem [shape: f32[32,32], index: 3, kind: input, shape index: {}]   ;;  %s676_s4 = inlined_call_operand.vmem [shape: f32[32,1], index: 4, kind: input, shape index: {}]   ;;  %s677_s5 = inlined_call_operand.vmem [shape: f32[32,1], index: 5, kind: input, shape index: {}]   ;;  %s678_s6 = inlined_call_operand.<no memory space> [shape: f32[1,1], index: 6, kind: input, shape index: {}]   ;;  %s679_s7 = inlined_call_operand.hbm [shape: f32[1,512], index: 7, kind: output, shape index: {}]  }
   0x1   :  { %v12_v0 = vstv %s678_s6 }
   0x2   :  { %13 = vst [vmem:[#allocation2] sm:$0x1] %v12_v0 }
   0x3   :  { %v81_v1 = vld [vmem:[%s674_s2 + $0x10] sm:$0xff]  ;;  %v82_v2 = vld [vmem:[%s674_s2 + $0x18] sm:$0xff]  ;;  %v545_v4 = vmov 0  }
   0x4   :  { %v33_v3 = vld [vmem:[%s673_s1 + $0x18] sm:$0xff]  ;;  %454 = vset.pattern.permute.xlu2 %v545_v4  ;;  %453 = vset.pattern.permute.xlu1 %v545_v4 }
   0x5   :  { %452 = vset.pattern.permute.xlu0 %v545_v4  ;;  %95 = vperm.xlu2 %454, %v81_v1  }
   0x6   :  { %100 = vperm.xlu1 %453, %v82_v2   ;;  %51 = vperm.xlu0 %452, %v33_v3  }
   0x7   :  { %14 = vsyncpa [#allocation4], 0  ;;  %v30_v5 = vld [vmem:[%s673_s1] sm:$0xff]  ;;  %v32_v6 = vld [vmem:[%s673_s1 + $0x10] sm:$0xff]  ;;  %vm163_vm0 = vcmask 261120   ;;  %vm406_vm1 = vcmask 1040384  }
   0x8   :  { %v31_v7 = vld [vmem:[%s673_s1 + $0x8] sm:$0xff]  ;;  %v139_v8 = vld [vmem:[%s676_s4] sm:$0xff]  ;;  %v142_v11 = vld [vmem:[%s676_s4 + $0x18] sm:$0xff]  ;;  %vm408_vm2 = vcmask 1042434   ;;  %s425_s18 = sshll.u32 %s679_s7, 4  ;;  %vm410_vm3 = vcmask 1041408   ;;  %s426_s18 = int_to_ptr.hbm [resolvable:$true] %s425_s18 }
   0x9   :  { %v80_v9 = vld [vmem:[%s674_s2 + $0x8] sm:$0xff]  ;;  %v79_v10 = vld [vmem:[%s674_s2] sm:$0xff]  ;;  %v141_v13 = vld [vmem:[%s676_s4 + $0x10] sm:$0xff] }
   0xa   :  { %v140_v12 = vld [vmem:[%s676_s4 + $0x8] sm:$0xff]  ;;  %v310_v14 = vld [vmem:[%s677_s5 + $0x10] sm:$0xff]  ;;  %v308_v15 = vld [vmem:[%s677_s5] sm:$0xff] }
   0xb   :  { %v309_v16 = vld [vmem:[%s677_s5 + $0x8] sm:$0xff]  ;;  %v311_v17 = vld [vmem:[%s677_s5 + $0x18] sm:$0xff]  ;;  %v384_v18 = vld [vmem:[#allocation2] sm:$0x1] }
   0xc   :  { %v29_v19 = vld [vmem:[%s672_s0] sm:$0xf] }
   0xd   :  { %36 = vperm.xlu2 %454, %v30_v5   ;;  %v55_v20 = vperm.slane %v29_v19, 0  ;;  %v56_v21 = vperm.slane %v29_v19, 1  ;;  %v57_v22 = vperm.slane %v29_v19, 2  ;;  %v58_v23 = vperm.slane %v29_v19, 3  ;;  %v138_v19 = vld [vmem:[%s675_s3 + $0x18] sm:$0xff] }
   0xe   :  { %46 = vperm.xlu0 %452, %v32_v6   ;;  %41 = vperm.xlu1 %453, %v31_v7  }
  0x15   :  { %145 = vperm.xlu2 %454, %v139_v8  }
  0x16   :  { %90 = vperm.xlu0 %452, %v80_v9   ;;  %85 = vperm.xlu1 %453, %v79_v10  }
  0x1d   :  { %160 = vperm.xlu2 %454, %v142_v11  }
  0x1e   :  { %150 = vperm.xlu0 %452, %v140_v12   ;;  %155 = vperm.xlu1 %453, %v141_v13   ;;  %v135_v12 = vld [vmem:[%s675_s3] sm:$0xff] }
  0x25   :  { %324 = vperm.xlu2 %454, %v310_v14  }
  0x26   :  { %314 = vperm.xlu0 %452, %v308_v15   ;;  %319 = vperm.xlu1 %453, %v309_v16  }
  0x2e   :  { %329 = vperm.xlu0 %452, %v311_v17   ;;  %387 = vperm.xlu1 %453, %v384_v18   ;;  %v136_v17 = vld [vmem:[%s675_s3 + $0x8] sm:$0xff]  ;;  %v137_v18 = vld [vmem:[%s675_s3 + $0x10] sm:$0xff]  ;;  %s546_s3 = smov [#allocation3]  }
  0x2f   :  { %s423_s15 = sshll.u32 %s546_s3, 4  ;;  %s424_s15 = int_to_ptr.vmem [resolvable:$true] %s423_s15 }
  0x5f   :  { %v96_v34 = vpop.permute.xlu2 %95 }
  0x67   :  { %v37_v49 = vpop.permute.xlu2 %36 }
  0x68   :  { %v63_v56 = vmul.f32 %v55_v20, %v37_v49  ;;  %v64_v60 = vmul.f32 %v56_v21, %v37_v49  ;;  %v65_v63 = vmul.f32 %v57_v22, %v37_v49  ;;  %v66_v2 = vmul.f32 %v58_v23, %v37_v49 }
  0x78   :  { %v101_v24 = vpop.permute.xlu1 %100  ;;  %v52_v25 = vpop.permute.xlu0 %51 }
  0x79   :  { %v75_v26 = vmul.f32 %v55_v20, %v52_v25  ;;  %v76_v27 = vmul.f32 %v56_v21, %v52_v25  ;;  %v77_v28 = vmul.f32 %v57_v22, %v52_v25  ;;  %v78_v29 = vmul.f32 %v58_v23, %v52_v25 }
  0x7b   :  { %v115_v30 = vadd.f32 %v101_v24, %v75_v26  ;;  %v116_v31 = vadd.f32 %v101_v24, %v76_v27  ;;  %v117_v32 = vadd.f32 %v101_v24, %v77_v28  ;;  %v118_v33 = vadd.f32 %v101_v24, %v78_v29  ;;  %v146_v26 = vpop.permute.xlu2 %145 }
  0x7d   :  { %455 = vtanh.f32 %v115_v30 }
  0x7e   :  { %457 = vtanh.f32 %v116_v31 }
  0x7f   :  { %459 = vtanh.f32 %v117_v32 }
  0x80   :  { %v47_v35 = vpop.permute.xlu0 %46  ;;  %v42_v36 = vpop.permute.xlu1 %41  ;;  %461 = vtanh.f32 %v118_v33 }
  0x81   :  { %v71_v37 = vmul.f32 %v55_v20, %v47_v35  ;;  %v72_v38 = vmul.f32 %v56_v21, %v47_v35  ;;  %v73_v39 = vmul.f32 %v57_v22, %v47_v35  ;;  %v74_v40 = vmul.f32 %v58_v23, %v47_v35 }
  0x82   :  { %v67_v50 = vmul.f32 %v55_v20, %v42_v36  ;;  %v68_v51 = vmul.f32 %v56_v21, %v42_v36  ;;  %v69_v52 = vmul.f32 %v57_v22, %v42_v36  ;;  %v70_v53 = vmul.f32 %v58_v23, %v42_v36 }
  0x83   :  { %v456_v41 = vpop.eup %455  ;;  %v111_v42 = vadd.f32 %v96_v34, %v71_v37  ;;  %v112_v43 = vadd.f32 %v96_v34, %v72_v38  ;;  %v113_v44 = vadd.f32 %v96_v34, %v73_v39  ;;  %v114_v46 = vadd.f32 %v96_v34, %v74_v40 }
  0x84   :  { %v458_v45 = vpop.eup %457  ;;  %188 = vmatpush.msra.mxu0 %v456_v41  ;;  %v161_v41 = vpop.permute.xlu2 %160 }
  0x85   :  { %v460_v47 = vpop.eup %459  ;;  %217 = vmatpush.msra.mxu1 %v458_v45  ;;  %463 = vtanh.f32 %v111_v42 }
  0x86   :  { %v462_v48 = vpop.eup %461  ;;  %246 = vmatpush.msra.mxu2 %v460_v47  ;;  %465 = vtanh.f32 %v112_v43 }
  0x87   :  { %275 = vmatpush.msra.mxu3 %v462_v48  ;;  %467 = vtanh.f32 %v113_v44 }
  0x88   :  { %v91_v54 = vpop.permute.xlu0 %90  ;;  %v86_v55 = vpop.permute.xlu1 %85  ;;  %469 = vtanh.f32 %v114_v46 }
  0x89   :  { %v107_v57 = vadd.f32 %v91_v54, %v67_v50  ;;  %v108_v58 = vadd.f32 %v91_v54, %v68_v51  ;;  %v109_v59 = vadd.f32 %v91_v54, %v69_v52  ;;  %v110_v61 = vadd.f32 %v91_v54, %v70_v53 }
  0x8a   :  { %v103_v0 = vadd.f32 %v86_v55, %v63_v56  ;;  %v104_v3 = vadd.f32 %v86_v55, %v64_v60  ;;  %v105_v5 = vadd.f32 %v86_v55, %v65_v63  ;;  %v106_v7 = vadd.f32 %v86_v55, %v66_v2 }
  0x8b   :  { %v464_v62 = vpop.eup %463  ;;  %471 = vtanh.f32 %v107_v57 }
  0x8c   :  { %v466_v1 = vpop.eup %465  ;;  %473 = vtanh.f32 %v108_v58  ;;  %189 = vmatpush.msra.mxu0 %v464_v62 }
  0x8d   :  { %v468_v4 = vpop.eup %467  ;;  %475 = vtanh.f32 %v109_v59  ;;  %218 = vmatpush.msra.mxu1 %v466_v1 }
  0x8e   :  { %v470_v6 = vpop.eup %469  ;;  %477 = vtanh.f32 %v110_v61  ;;  %247 = vmatpush.msra.mxu2 %v468_v4 }
  0x8f   :  { %479 = vtanh.f32 %v103_v0  ;;  %276 = vmatpush.msra.mxu3 %v470_v6  ;;  %v325_v0 = vpop.permute.xlu2 %324 }
  0x90   :  { %481 = vtanh.f32 %v104_v3  ;;  %v151_v27 = vpop.permute.xlu0 %150  ;;  %v156_v37 = vpop.permute.xlu1 %155 }
  0x91   :  { %v472_v8 = vpop.eup %471  ;;  %483 = vtanh.f32 %v105_v5 }
  0x92   :  { %v474_v9 = vpop.eup %473  ;;  %485 = vtanh.f32 %v106_v7  ;;  %190 = vmatpush.msra.mxu0 %v472_v8 }
  0x93   :  { %v476_v10 = vpop.eup %475  ;;  %219 = vmatpush.msra.mxu1 %v474_v9 }
  0x94   :  { %v478_v11 = vpop.eup %477  ;;  %248 = vmatpush.msra.mxu2 %v476_v10 }
  0x95   :  { %v480_v13 = vpop.eup %479  ;;  %277 = vmatpush.msra.mxu3 %v478_v11 }
  0x96   :  { %v482_v14 = vpop.eup %481  ;;  %191 = vmatpush.msra.mxu0 %v480_v13 }
  0x97   :  { %v484_v15 = vpop.eup %483  ;;  %220 = vmatpush.msra.mxu1 %v482_v14  ;;  %434 = vmatmul.msk.f32.vlgmr.msra.gmra.mxu0 %vm163_vm0, %v135_v12 }
  0x98   :  { %v486_v16 = vpop.eup %485  ;;  %249 = vmatpush.msra.mxu2 %v484_v15  ;;  %438 = vmatmul.msk.f32.vlgmr.msra.gmra.mxu1 %vm163_vm0, %v135_v12  ;;  %v315_v45 = vpop.permute.xlu0 %314 }
  0x99   :  { %278 = vmatpush.msra.mxu3 %v486_v16  ;;  %442 = vmatmul.msk.f32.vlgmr.msra.gmra.mxu2 %vm163_vm0, %v135_v12  ;;  %v320_v60 = vpop.permute.xlu1 %319 }
  0x9a   :  { %446 = vmatmul.msk.f32.vlgmr.msra.gmra.mxu3 %vm163_vm0, %v135_v12 }
  0x9f   :  { %435 = vmatmul.msk.f32.gmra.mxu0 %vm163_vm0, %v136_v17 }
  0xa0   :  { %439 = vmatmul.msk.f32.gmra.mxu1 %vm163_vm0, %v136_v17  ;;  %v330_v15 = vpop.permute.xlu0 %329 }
  0xa1   :  { %443 = vmatmul.msk.f32.gmra.mxu2 %vm163_vm0, %v136_v17 }
  0xa2   :  { %447 = vmatmul.msk.f32.gmra.mxu3 %vm163_vm0, %v136_v17 }
  0xa7   :  { %436 = vmatmul.msk.f32.gmra.mxu0 %vm163_vm0, %v137_v18 }
  0xa8   :  { %440 = vmatmul.msk.f32.gmra.mxu1 %vm163_vm0, %v137_v18 }
  0xa9   :  { %444 = vmatmul.msk.f32.gmra.mxu2 %vm163_vm0, %v137_v18 }
  0xaa   :  { %448 = vmatmul.msk.f32.gmra.mxu3 %vm163_vm0, %v137_v18 }
  0xaf   :  { %437 = vmatmul.msk.f32.gmra.mxu0 %vm163_vm0, %v138_v19 }
  0xb0   :  { %441 = vmatmul.msk.f32.gmra.mxu1 %vm163_vm0, %v138_v19 }
  0xb1   :  { %445 = vmatmul.msk.f32.gmra.mxu2 %vm163_vm0, %v138_v19 }
  0xb2   :  { %449 = vmatmul.msk.f32.gmra.mxu3 %vm163_vm0, %v138_v19 }
 0x114   :  { %v193_v20 = vpop.f32.mrf.mxu0 }
 0x115   :  { %v222_v21 = vpop.f32.mrf.mxu1  ;;  %v194_v28 = vadd.f32 %v193_v20, %v146_v26 }
 0x116   :  { %v223_v29 = vadd.f32 %v222_v21, %v146_v26 }
 0x117   :  { %487 = vtanh.f32 %v194_v28 }
 0x118   :  { %489 = vtanh.f32 %v223_v29 }
 0x11c   :  { %v251_v22 = vpop.f32.mrf.mxu2  ;;  %v196_v23 = vpop.f32.mrf.mxu0 }
 0x11d   :  { %v280_v24 = vpop.f32.mrf.mxu3  ;;  %v225_v25 = vpop.f32.mrf.mxu1  ;;  %v252_v30 = vadd.f32 %v251_v22, %v146_v26  ;;  %v197_v34 = vadd.f32 %v196_v23, %v151_v27 }
 0x11e   :  { %v281_v31 = vadd.f32 %v280_v24, %v146_v26  ;;  %v226_v38 = vadd.f32 %v225_v25, %v151_v27  ;;  %v488_v44 = vpop.eup %487 }
 0x11f   :  { %491 = vtanh.f32 %v252_v30  ;;  %v490_v46 = vpop.eup %489  ;;  %v332_v3 = vmul.f32 %v488_v44, %v315_v45 }
 0x120   :  { %493 = vtanh.f32 %v281_v31  ;;  %v333_v7 = vmul.f32 %v490_v46, %v315_v45 }
 0x121   :  { %495 = vtanh.f32 %v197_v34 }
 0x122   :  { %497 = vtanh.f32 %v226_v38 }
 0x124   :  { %v254_v32 = vpop.f32.mrf.mxu2  ;;  %v199_v33 = vpop.f32.mrf.mxu0 }
 0x125   :  { %v283_v35 = vpop.f32.mrf.mxu3  ;;  %v228_v36 = vpop.f32.mrf.mxu1  ;;  %v200_v39 = vadd.f32 %v199_v33, %v156_v37  ;;  %v255_v42 = vadd.f32 %v254_v32, %v151_v27 }
 0x126   :  { %v229_v40 = vadd.f32 %v228_v36, %v156_v37  ;;  %v284_v43 = vadd.f32 %v283_v35, %v151_v27  ;;  %v492_v49 = vpop.eup %491 }
 0x127   :  { %499 = vtanh.f32 %v200_v39  ;;  %v494_v54 = vpop.eup %493  ;;  %v334_v24 = vmul.f32 %v492_v49, %v315_v45 }
 0x128   :  { %501 = vtanh.f32 %v229_v40  ;;  %v496_v57 = vpop.eup %495  ;;  %v335_v27 = vmul.f32 %v494_v54, %v315_v45 }
 0x129   :  { %503 = vtanh.f32 %v255_v42  ;;  %v498_v58 = vpop.eup %497  ;;  %v336_v62 = vmul.f32 %v496_v57, %v320_v60 }
 0x12a   :  { %505 = vtanh.f32 %v284_v43  ;;  %v337_v1 = vmul.f32 %v498_v58, %v320_v60 }
 0x12b   :  { %v348_v12 = vadd.f32 %v336_v62, %v332_v3 }
 0x12c   :  { %v257_v47 = vpop.f32.mrf.mxu2  ;;  %v202_v48 = vpop.f32.mrf.mxu0  ;;  %v357_v16 = vadd.f32 %v337_v1, %v333_v7 }
 0x12d   :  { %v258_v50 = vadd.f32 %v257_v47, %v156_v37  ;;  %v286_v51 = vpop.f32.mrf.mxu3  ;;  %v203_v52 = vadd.f32 %v202_v48, %v161_v41  ;;  %v231_v53 = vpop.f32.mrf.mxu1 }
 0x12e   :  { %v287_v55 = vadd.f32 %v286_v51, %v156_v37  ;;  %v232_v56 = vadd.f32 %v231_v53, %v161_v41  ;;  %v500_v59 = vpop.eup %499 }
 0x12f   :  { %507 = vtanh.f32 %v258_v50  ;;  %v502_v61 = vpop.eup %501  ;;  %v340_v4 = vmul.f32 %v500_v59, %v325_v0  ;;  %v388_v50 = vpop.permute.xlu1 %387 }
 0x130   :  { %509 = vtanh.f32 %v287_v55  ;;  %v504_v63 = vpop.eup %503  ;;  %v341_v8 = vmul.f32 %v502_v61, %v325_v0  ;;  %v390_v55 = vperm.slane %v388_v50, 0 }
 0x131   :  { %511 = vtanh.f32 %v203_v52  ;;  %v506_v2 = vpop.eup %505  ;;  %v338_v18 = vmul.f32 %v504_v63, %v320_v60  ;;  %v349_v19 = vadd.f32 %v348_v12, %v340_v4 }
 0x132   :  { %513 = vtanh.f32 %v232_v56  ;;  %v339_v21 = vmul.f32 %v506_v2, %v320_v60  ;;  %v358_v22 = vadd.f32 %v357_v16, %v341_v8  ;;  %v413_v8 = vlaneseq }
 0x133   :  { %v366_v30 = vadd.f32 %v338_v18, %v334_v24 }
 0x134   :  { %v260_v5 = vpop.f32.mrf.mxu2  ;;  %v375_v33 = vadd.f32 %v339_v21, %v335_v27  ;;  %vm415_vm4 = vcmp.lt.s32.totalorder %v413_v8, 512 }
 0x135   :  { %v508_v6 = vpop.eup %507  ;;  %v261_v9 = vadd.f32 %v260_v5, %v161_v41  ;;  %v289_v10 = vpop.f32.mrf.mxu3 }
 0x136   :  { %v510_v11 = vpop.eup %509  ;;  %v290_v13 = vadd.f32 %v289_v10, %v161_v41  ;;  %v342_v25 = vmul.f32 %v508_v6, %v325_v0 }
 0x137   :  { %v512_v14 = vpop.eup %511  ;;  %515 = vtanh.f32 %v261_v9  ;;  %v343_v28 = vmul.f32 %v510_v11, %v325_v0 }
 0x138   :  { %v514_v17 = vpop.eup %513  ;;  %v344_v20 = vmul.f32 %v512_v14, %v330_v15  ;;  %517 = vtanh.f32 %v290_v13  ;;  %v367_v36 = vadd.f32 %v366_v30, %v342_v25 }
 0x139   :  { %v345_v23 = vmul.f32 %v514_v17, %v330_v15  ;;  %v376_v39 = vadd.f32 %v375_v33, %v343_v28 }
 0x13a   :  { %v350_v26 = vadd.f32 %v349_v19, %v344_v20 }
 0x13b   :  { %v359_v29 = vadd.f32 %v358_v22, %v345_v23 }
 0x13c   :  { %v351_v31 = vrot.slane %v350_v26, 4 }
 0x13d   :  { %v516_v32 = vpop.eup %515  ;;  %v360_v34 = vrot.slane %v359_v29, 4 }
 0x13e   :  { %v518_v35 = vpop.eup %517  ;;  %v352_v37 = vadd.f32 %v351_v31, %v350_v26  ;;  %v346_v38 = vmul.f32 %v516_v32, %v330_v15 }
 0x13f   :  { %v361_v40 = vadd.f32 %v360_v34, %v359_v29  ;;  %v347_v41 = vmul.f32 %v518_v35, %v330_v15 }
 0x140   :  { %v353_v42 = vrot.slane %v352_v37, 2  ;;  %v368_v43 = vadd.f32 %v367_v36, %v346_v38 }
 0x141   :  { %v362_v44 = vrot.slane %v361_v40, 2  ;;  %v377_v46 = vadd.f32 %v376_v39, %v347_v41 }
 0x142   :  { %v369_v47 = vrot.slane %v368_v43, 4  ;;  %v354_v45 = vadd.f32 %v353_v42, %v352_v37 }
 0x143   :  { %v363_v48 = vadd.f32 %v362_v44, %v361_v40  ;;  %v378_v49 = vrot.slane %v377_v46, 4 }
 0x144   :  { %v370_v51 = vadd.f32 %v369_v47, %v368_v43  ;;  %v355_v57 = vrot.slane %v354_v45, 1 }
 0x145   :  { %v364_v52 = vrot.slane %v363_v48, 1  ;;  %v379_v53 = vadd.f32 %v378_v49, %v377_v46 }
 0x146   :  { %v371_v54 = vrot.slane %v370_v51, 2  ;;  %v356_v0 = vadd.f32 %v355_v57, %v354_v45 }
 0x147   :  { %v380_v56 = vrot.slane %v379_v53, 2  ;;  %v365_v58 = vadd.f32 %v364_v52, %v363_v48 }
 0x148   :  { %v372_v59 = vadd.f32 %v371_v54, %v370_v51  ;;  %v391_v5 = vadd.f32 %v390_v55, %v356_v0 }
 0x149   :  { %v381_v60 = vadd.f32 %v380_v56, %v379_v53  ;;  %v392_v61 = vadd.f32 %v390_v55, %v365_v58 }
 0x14a   :  { %v373_v62 = vrot.slane %v372_v59, 1  ;;  %v395_v12 = vmul.f32 300.0, %v391_v5 }
 0x14b   :  { %v382_v63 = vrot.slane %v381_v60, 1  ;;  %v396_v3 = vmul.f32 300.0, %v392_v61 }
 0x14c   :  { %v374_v1 = vadd.f32 %v373_v62, %v372_v59 }
 0x14d   :  { %v383_v2 = vadd.f32 %v382_v63, %v381_v60  ;;  %v403_v10 = vrot.slane %v396_v3, 7 }
 0x14e   :  { %v393_v4 = vadd.f32 %v390_v55, %v374_v1 }
 0x14f   :  { %v394_v6 = vadd.f32 %v390_v55, %v383_v2  ;;  %v407_v14 = vsel %vm406_vm1, %v395_v12, %v403_v10 }
 0x150   :  { %v397_v7 = vmul.f32 300.0, %v393_v4 }
 0x151   :  { %v398_v9 = vmul.f32 300.0, %v394_v6 }
 0x152   :  { %v404_v11 = vrot.slane %v397_v7, 6 }
 0x153   :  { %v405_v13 = vrot.slane %v398_v9, 5 }
 0x155   :  { %v409_v15 = vsel %vm408_vm2, %v404_v11, %v405_v13 }
 0x156   :  { %v411_v16 = vsel %vm410_vm3, %v407_v14, %v409_v15 }
 0x157   :  { %417 = vst.msk [vmem:[#allocation3] sm:$0xf] %vm415_vm4, %v411_v16 }
 0x158   :  { %428 = dma.vmem_to_hbm [thread:$0]  %s424_s15, 64, %s426_s18, [#allocation4]  }
 0x159   :  { %543 = dma.done.wait [#allocation4], 64  }
 0x15a   :  { %544 = vsyncadd [#allocation4], 4294967232 }
 0x15b   :  { %433 = vsyncpa [#allocation4], 1 }

</bundles_post_ra>
